<compile_context>
chip_gen: v7x
topology: tpu7x:2x2x1
jax: 0.10.0
libtpu: 0.0.40
codegen_flags: <defaults>
</compile_context>

<pallas_src>
import functools

import jax
import jax.numpy as jnp
from jax.experimental import pallas as pl
from jax.experimental.pallas import tpu as pltpu


def _round_up(x, m):
    return (x + m - 1) // m * m


# ----------------------------------------------------------------------------
# Pallas kernel: one grid step == bt batch elements, all heads.
# ----------------------------------------------------------------------------
def _attention_kernel(x_ref, wqkv_ref, bias_ref, wo_ref, bo_ref, o_ref, av_ref,
                      *, bt, n, heads, d):
    # x_ref:    (bt, N, Cin)      bf16
    # wqkv_ref: (Cin, 3*inner)    bf16, columns = [q_h0..q_hH | k_h0.. | v_h0..],
    #                             1/sqrt(d) folded into the Q columns (resident)
    # bias_ref: (heads, N, N)     f32  relative-position bias (resident)
    # wo_ref:   (inner, Cp)       bf16 output projection (resident)
    # bo_ref:   (1, Cp)           f32  output bias (resident)
    # o_ref:    (bt, N, Cp)       f32
    # av_ref:   (bt*N, inner)     bf16 VMEM scratch staging all heads' AV slices
    inner = heads * d

    # ---- fused QKV projection: one MXU matmul, full 3*inner lane width ----
    x = x_ref[...].reshape(bt * n, -1)                                     # (bt*N, Cin) bf16
    qkv = jnp.dot(x, wqkv_ref[...], preferred_element_type=jnp.float32)    # (bt*N, 3*inner)
    qkv = qkv.reshape(bt, n, 3 * inner)

    # ---- per-head attention (static unroll; softmax in f32) ----
    for h in range(heads):
        q = qkv[:, :, h * d:(h + 1) * d].astype(jnp.bfloat16)                       # (bt,N,d)
        k = qkv[:, :, inner + h * d:inner + (h + 1) * d].astype(jnp.bfloat16)
        v = qkv[:, :, 2 * inner + h * d:2 * inner + (h + 1) * d].astype(jnp.bfloat16)

        dots = jnp.einsum('bnd,bmd->bnm', q, k,
                          preferred_element_type=jnp.float32)                        # (bt,N,N)
        dots = dots + bias_ref[h]                                                    # (N,N) bcast
        m = jnp.max(dots, axis=-1, keepdims=True)
        e = jnp.exp(dots - m)
        attn = e * pl.reciprocal(jnp.sum(e, axis=-1, keepdims=True), approx=True)

        av = jnp.einsum('bnm,bmd->bnd', attn.astype(jnp.bfloat16), v,
                        preferred_element_type=jnp.float32)                          # (bt,N,d)
        av_ref[:, h * d:(h + 1) * d] = av.reshape(bt * n, d).astype(jnp.bfloat16)

    # ---- single output projection with contraction depth K = inner ----
    out = jnp.dot(av_ref[...], wo_ref[...], preferred_element_type=jnp.float32)      # (bt*N, Cp)
    out = out + bo_ref[...]
    o_ref[...] = out.reshape(o_ref.shape).astype(o_ref.dtype)


def attention_pallas(x, w_qkv, rel_bias, w_out, b_out, *, heads, head_channel,
                     bt_max=8):
    """x: (B, N, Cin) -> (B, N, Cout)."""
    B, N, Cin = x.shape
    inner = heads * head_channel
    Cout = w_out.shape[1]
    scale = float(head_channel) ** (-0.5)
    out_dtype = x.dtype

    # ---- batch tile: divide B, keep >= 2 grid steps when B >= 2 (megacore) ----
    bt = 1
    for cand in range(min(bt_max, B), 0, -1):
        if B % cand == 0 and (B // cand >= 2 or B == 1):
            bt = cand
            break

    # ---- host-side layout plumbing (pure re-layout, no math change) ----
    # fused QKV weight; the PyTorch Linear column order is already
    # [q(h0 d)..q(hH d) | k(..) | v(..)]; fold 1/sqrt(d) into the Q columns.
    wqkv = w_qkv.astype(jnp.float32)
    wqkv = wqkv.at[:, :inner].multiply(scale).astype(jnp.bfloat16)
    # lane-dense output: pad Cout up to a multiple of 128 (sliced back below)
    Cp = _round_up(Cout, 128)
    wo = jnp.pad(w_out, ((0, 0), (0, Cp - Cout))).astype(jnp.bfloat16)
    bo = jnp.pad(b_out.reshape(1, Cout).astype(jnp.float32),
                 ((0, 0), (0, Cp - Cout)))
    x_bf = x.astype(jnp.bfloat16)
    bias = rel_bias.astype(jnp.float32)

    kernel = functools.partial(_attention_kernel, bt=bt, n=N,
                               heads=heads, d=head_channel)

    out = pl.pallas_call(
        kernel,
        out_shape=jax.ShapeDtypeStruct((B, N, Cp), jnp.float32),
        grid_spec=pltpu.PrefetchScalarGridSpec(
            num_scalar_prefetch=0,
            grid=(B // bt,),
            in_specs=[
                pl.BlockSpec((bt, N, Cin), lambda b: (b, 0, 0)),       # x (bf16)
                pl.BlockSpec((Cin, 3 * inner), lambda b: (0, 0)),      # fused W_qkv (resident)
                pl.BlockSpec((heads, N, N), lambda b: (0, 0, 0)),      # rel bias (resident)
                pl.BlockSpec((inner, Cp), lambda b: (0, 0)),           # W_out (resident)
                pl.BlockSpec((1, Cp), lambda b: (0, 0)),               # b_out (resident)
            ],
            out_specs=pl.BlockSpec((bt, N, Cp), lambda b: (b, 0, 0)),
            scratch_shapes=[pltpu.VMEM((bt * N, inner), jnp.bfloat16)],
        ),
        compiler_params=pltpu.CompilerParams(
            dimension_semantics=("parallel",),
            vmem_limit_bytes=48 * 1024 * 1024,   # fits v5e/v6e/v7x scoped limits
        ),
    )(x_bf, wqkv, bias, wo, bo)

    out = out[..., :Cout] if Cp != Cout else out
    return out.astype(out_dtype)


# ----------------------------------------------------------------------------
# Glue: relative-position index + bias gather (matches the PyTorch buffers).
# ----------------------------------------------------------------------------
def make_relative_index(img_h, img_w):
    yy, xx = jnp.meshgrid(jnp.arange(img_h), jnp.arange(img_w), indexing="ij")
    coords = jnp.stack([yy, xx]).reshape(2, -1)            # (2, N)
    rel = coords[:, :, None] - coords[:, None, :]          # (2, N, N)
    rel = rel.at[0].add(img_h - 1)
    rel = rel.at[1].add(img_w - 1)
    rel = rel.at[0].multiply(2 * img_w - 1)
    rel = jnp.transpose(rel, (1, 2, 0))                    # (N, N, 2)
    return rel.sum(-1).reshape(-1)                         # (N*N,)


def gather_relative_bias(table, rel_index, img_h, img_w, heads):
    N = img_h * img_w
    bias = table[rel_index]                                # (N*N, heads)
    # '(h w) c -> 1 c h w' with h = w = N  ->  (heads, N, N)
    return jnp.transpose(bias.reshape(N, N, heads), (2, 0, 1))


# ----------------------------------------------------------------------------
# Pure-JAX f32 reference (mirrors the PyTorch forward) for a sanity check.
# ----------------------------------------------------------------------------
def attention_ref(x, w_qkv, rel_bias, w_out, b_out, *, heads, head_channel):
    B, N, _ = x.shape
    inner = heads * head_channel
    scale = float(head_channel) ** (-0.5)
    qkv = x @ w_qkv                                        # (B, N, 3*inner)
    q, k, v = jnp.split(qkv, 3, axis=-1)
    def split_heads(t):
        return jnp.transpose(t.reshape(B, N, heads, head_channel), (0, 2, 1, 3))
    q, k, v = map(split_heads, (q, k, v))
    dots = jnp.einsum("bhnd,bhmd->bhnm", q, k) * scale + rel_bias[None]
    attn = jax.nn.softmax(dots, axis=-1)
    out = jnp.einsum("bhnm,bhmd->bhnd", attn, v)
    out = jnp.transpose(out, (0, 2, 1, 3)).reshape(B, N, inner)
    return out @ w_out + b_out


if __name__ == "__main__":
    # Small, module-consistent shapes.
    B = 2
    img_h, img_w = 4, 4
    N = img_h * img_w
    in_channel = 32
    out_channel = 32
    heads = 2
    head_channel = 16
    inner = heads * head_channel

    key = jax.random.PRNGKey(0)
    k1, k2, k3, k4, k5 = jax.random.split(key, 5)

    x = jax.random.normal(k1, (B, N, in_channel), dtype=jnp.float32)
    w_qkv = jax.random.normal(k2, (in_channel, 3 * inner), dtype=jnp.float32) * 0.05
    w_out = jax.random.normal(k3, (inner, out_channel), dtype=jnp.float32) * 0.05
    b_out = jax.random.normal(k4, (1, out_channel), dtype=jnp.float32) * 0.05
    # relative_bias_table: ((2h-1)*(2w-1), heads)  (zeros in __init__; use small
    # deterministic values here so the bias path is exercised)
    table = jax.random.normal(k5, ((2 * img_h - 1) * (2 * img_w - 1), heads),
                              dtype=jnp.float32) * 0.05

    rel_index = make_relative_index(img_h, img_w)
    rel_bias = gather_relative_bias(table, rel_index, img_h, img_w, heads)  # (heads, N, N)

    out = attention_pallas(x, w_qkv, rel_bias, w_out, b_out,
                           heads=heads, head_channel=head_channel)
    out = jax.block_until_ready(out)

    ref = attention_ref(x, w_qkv, rel_bias, w_out, b_out,
                        heads=heads, head_channel=head_channel)
    assert out.shape == (B, N, out_channel)
    # bf16 MXU operands + approx reciprocal -> slightly looser tolerance than f32.
    assert jnp.allclose(out, ref, atol=3e-2, rtol=3e-2), "mismatch vs reference"

    print("KERNEL_OK")
</pallas_src>

<mosaic_0001>
module attributes {stable_mosaic.version = 11 : i64} {
  func.func @_attention_kernel(%arg0: i32, %arg1: memref<1x16x32xbf16, #tpu.memory_space<vmem>>, %arg2: memref<32x96xbf16, #tpu.memory_space<vmem>>, %arg3: memref<2x16x16xf32, #tpu.memory_space<vmem>>, %arg4: memref<32x128xbf16, #tpu.memory_space<vmem>>, %arg5: memref<1x128xf32, #tpu.memory_space<vmem>>, %arg6: memref<1x16x128xf32, #tpu.memory_space<vmem>>, %arg7: memref<16x32xbf16, #tpu.memory_space<vmem>>) attributes {dimension_semantics = [#tpu.dimension_semantics<parallel>], iteration_bounds = array<i64: 2>, scalar_prefetch = 0 : i64, scratch_operands = 1 : i64, tpu.core_type = #tpu.core_type<tc>, window_params = [{transform_indices = @transform_0, window_bounds = array<i64: 1, 16, 32>}, {pipeline_mode = #tpu.pipeline_mode<synchronous>, transform_indices = @transform_1, window_bounds = array<i64: 32, 96>}, {pipeline_mode = #tpu.pipeline_mode<synchronous>, transform_indices = @transform_2, window_bounds = array<i64: 2, 16, 16>}, {pipeline_mode = #tpu.pipeline_mode<synchronous>, transform_indices = @transform_3, window_bounds = array<i64: 32, 128>}, {pipeline_mode = #tpu.pipeline_mode<synchronous>, transform_indices = @transform_4, window_bounds = array<i64: 1, 128>}, {transform_indices = @transform_5, window_bounds = array<i64: 1, 16, 128>}]} {
    %c0 = arith.constant 0 : index
    %c0_0 = arith.constant 0 : index
    %c0_1 = arith.constant 0 : index
    %0 = vector.load %arg1[%c0, %c0_0, %c0_1] : memref<1x16x32xbf16, #tpu.memory_space<vmem>>, vector<1x16x32xbf16>
    %1 = vector.shape_cast %0 : vector<1x16x32xbf16> to vector<16x32xbf16>
    %c0_2 = arith.constant 0 : index
    %c0_3 = arith.constant 0 : index
    %2 = vector.load %arg2[%c0_2, %c0_3] : memref<32x96xbf16, #tpu.memory_space<vmem>>, vector<32x96xbf16>
    %cst = arith.constant dense<0.000000e+00> : vector<16x96xf32>
    %3 = tpu.matmul %1, %2, %cst {dimension_numbers = #tpu.dot_dimension_numbers<[1], [0], [0], [1], [0, 0, 1, 1], [], []>} : vector<16x32xbf16>, vector<32x96xbf16>, vector<16x96xf32> -> vector<16x96xf32>
    %4 = vector.shape_cast %3 : vector<16x96xf32> to vector<1x16x96xf32>
    %5 = vector.extract_strided_slice %4 {offsets = [0, 0, 0], sizes = [1, 16, 16], strides = [1, 1, 1]} : vector<1x16x96xf32> to vector<1x16x16xf32>
    %6 = arith.truncf %5 : vector<1x16x16xf32> to vector<1x16x16xbf16>
    %7 = vector.extract_strided_slice %4 {offsets = [0, 0, 32], sizes = [1, 16, 16], strides = [1, 1, 1]} : vector<1x16x96xf32> to vector<1x16x16xf32>
    %8 = arith.truncf %7 : vector<1x16x16xf32> to vector<1x16x16xbf16>
    %9 = vector.extract_strided_slice %4 {offsets = [0, 0, 64], sizes = [1, 16, 16], strides = [1, 1, 1]} : vector<1x16x96xf32> to vector<1x16x16xf32>
    %10 = arith.truncf %9 : vector<1x16x16xf32> to vector<1x16x16xbf16>
    "tpu.trace_start"() <{level = 10 : i32, message = "bnd,bmd->bnm"}> : () -> ()
    %cst_4 = arith.constant dense<0.000000e+00> : vector<1x16x16xf32>
    %11 = tpu.matmul %6, %8, %cst_4 {dimension_numbers = #tpu.dot_dimension_numbers<[2], [2], [1], [1], [0, 0, 0, 1, 1, 1], [0], [0]>} : vector<1x16x16xbf16>, vector<1x16x16xbf16>, vector<1x16x16xf32> -> vector<1x16x16xf32>
    "tpu.trace_stop"() : () -> ()
    %c0_5 = arith.constant 0 : index
    %c0_6 = arith.constant 0 : index
    %c0_7 = arith.constant 0 : index
    %12 = vector.load %arg3[%c0_5, %c0_6, %c0_7] : memref<2x16x16xf32, #tpu.memory_space<vmem>>, vector<1x16x16xf32>
    %13 = vector.shape_cast %12 : vector<1x16x16xf32> to vector<16x16xf32>
    %14 = vector.shape_cast %13 : vector<16x16xf32> to vector<1x16x16xf32>
    %15 = arith.addf %11, %14 : vector<1x16x16xf32>
    %cst_8 = arith.constant dense<0xFF800000> : vector<1x16xf32>
    %16 = vector.multi_reduction <maximumf>, %15, %cst_8 [2] : vector<1x16x16xf32> to vector<1x16xf32>
    %17 = vector.shape_cast %16 : vector<1x16xf32> to vector<1x16x1xf32>
    %18 = vector.broadcast %17 : vector<1x16x1xf32> to vector<1x16x16xf32>
    %19 = arith.subf %15, %18 : vector<1x16x16xf32>
    %20 = math.exp %19 : vector<1x16x16xf32>
    %cst_9 = arith.constant dense<0.000000e+00> : vector<1x16xf32>
    %21 = vector.multi_reduction <add>, %20, %cst_9 [2] : vector<1x16x16xf32> to vector<1x16xf32>
    %22 = vector.shape_cast %21 : vector<1x16xf32> to vector<1x16x1xf32>
    %23 = tpu.reciprocal %22 {approx = true} : vector<1x16x1xf32> -> vector<1x16x1xf32>
    %24 = vector.broadcast %23 : vector<1x16x1xf32> to vector<1x16x16xf32>
    %25 = arith.mulf %20, %24 : vector<1x16x16xf32>
    %26 = arith.truncf %25 : vector<1x16x16xf32> to vector<1x16x16xbf16>
    "tpu.trace_start"() <{level = 10 : i32, message = "bnm,bmd->bnd"}> : () -> ()
    %cst_10 = arith.constant dense<0.000000e+00> : vector<1x16x16xf32>
    %27 = tpu.matmul %26, %10, %cst_10 {dimension_numbers = #tpu.dot_dimension_numbers<[2], [1], [1], [2], [0, 0, 0, 1, 1, 2], [0], [0]>} : vector<1x16x16xbf16>, vector<1x16x16xbf16>, vector<1x16x16xf32> -> vector<1x16x16xf32>
    "tpu.trace_stop"() : () -> ()
    %28 = vector.shape_cast %27 : vector<1x16x16xf32> to vector<16x16xf32>
    %29 = arith.truncf %28 : vector<16x16xf32> to vector<16x16xbf16>
    %c0_11 = arith.constant 0 : index
    %c0_12 = arith.constant 0 : index
    %30 = vector.load %arg7[%c0_11, %c0_12] : memref<16x32xbf16, #tpu.memory_space<vmem>>, vector<16x16xbf16>
    tpu.vector_store %arg7[%c0_11, %c0_12], %29 {strides = array<i32>} : memref<16x32xbf16, #tpu.memory_space<vmem>>, vector<16x16xbf16>,
    %31 = vector.extract_strided_slice %4 {offsets = [0, 0, 16], sizes = [1, 16, 16], strides = [1, 1, 1]} : vector<1x16x96xf32> to vector<1x16x16xf32>
    %32 = arith.truncf %31 : vector<1x16x16xf32> to vector<1x16x16xbf16>
    %33 = vector.extract_strided_slice %4 {offsets = [0, 0, 48], sizes = [1, 16, 16], strides = [1, 1, 1]} : vector<1x16x96xf32> to vector<1x16x16xf32>
    %34 = arith.truncf %33 : vector<1x16x16xf32> to vector<1x16x16xbf16>
    %35 = vector.extract_strided_slice %4 {offsets = [0, 0, 80], sizes = [1, 16, 16], strides = [1, 1, 1]} : vector<1x16x96xf32> to vector<1x16x16xf32>
    %36 = arith.truncf %35 : vector<1x16x16xf32> to vector<1x16x16xbf16>
    "tpu.trace_start"() <{level = 10 : i32, message = "bnd,bmd->bnm"}> : () -> ()
    %cst_13 = arith.constant dense<0.000000e+00> : vector<1x16x16xf32>
    %37 = tpu.matmul %32, %34, %cst_13 {dimension_numbers = #tpu.dot_dimension_numbers<[2], [2], [1], [1], [0, 0, 0, 1, 1, 1], [0], [0]>} : vector<1x16x16xbf16>, vector<1x16x16xbf16>, vector<1x16x16xf32> -> vector<1x16x16xf32>
    "tpu.trace_stop"() : () -> ()
    %c1 = arith.constant 1 : index
    %c0_14 = arith.constant 0 : index
    %c0_15 = arith.constant 0 : index
    %38 = vector.load %arg3[%c1, %c0_14, %c0_15] : memref<2x16x16xf32, #tpu.memory_space<vmem>>, vector<1x16x16xf32>
    %39 = vector.shape_cast %38 : vector<1x16x16xf32> to vector<16x16xf32>
    %40 = vector.shape_cast %39 : vector<16x16xf32> to vector<1x16x16xf32>
    %41 = arith.addf %37, %40 : vector<1x16x16xf32>
    %cst_16 = arith.constant dense<0xFF800000> : vector<1x16xf32>
    %42 = vector.multi_reduction <maximumf>, %41, %cst_16 [2] : vector<1x16x16xf32> to vector<1x16xf32>
    %43 = vector.shape_cast %42 : vector<1x16xf32> to vector<1x16x1xf32>
    %44 = vector.broadcast %43 : vector<1x16x1xf32> to vector<1x16x16xf32>
    %45 = arith.subf %41, %44 : vector<1x16x16xf32>
    %46 = math.exp %45 : vector<1x16x16xf32>
    %cst_17 = arith.constant dense<0.000000e+00> : vector<1x16xf32>
    %47 = vector.multi_reduction <add>, %46, %cst_17 [2] : vector<1x16x16xf32> to vector<1x16xf32>
    %48 = vector.shape_cast %47 : vector<1x16xf32> to vector<1x16x1xf32>
    %49 = tpu.reciprocal %48 {approx = true} : vector<1x16x1xf32> -> vector<1x16x1xf32>
    %50 = vector.broadcast %49 : vector<1x16x1xf32> to vector<1x16x16xf32>
    %51 = arith.mulf %46, %50 : vector<1x16x16xf32>
    %52 = arith.truncf %51 : vector<1x16x16xf32> to vector<1x16x16xbf16>
    "tpu.trace_start"() <{level = 10 : i32, message = "bnm,bmd->bnd"}> : () -> ()
    %cst_18 = arith.constant dense<0.000000e+00> : vector<1x16x16xf32>
    %53 = tpu.matmul %52, %36, %cst_18 {dimension_numbers = #tpu.dot_dimension_numbers<[2], [1], [1], [2], [0, 0, 0, 1, 1, 2], [0], [0]>} : vector<1x16x16xbf16>, vector<1x16x16xbf16>, vector<1x16x16xf32> -> vector<1x16x16xf32>
    "tpu.trace_stop"() : () -> ()
    %54 = vector.shape_cast %53 : vector<1x16x16xf32> to vector<16x16xf32>
    %55 = arith.truncf %54 : vector<16x16xf32> to vector<16x16xbf16>
    %c0_19 = arith.constant 0 : index
    %c16 = arith.constant 16 : index
    %56 = vector.load %arg7[%c0_19, %c16] : memref<16x32xbf16, #tpu.memory_space<vmem>>, vector<16x16xbf16>
    tpu.vector_store %arg7[%c0_19, %c16], %55 {strides = array<i32>} : memref<16x32xbf16, #tpu.memory_space<vmem>>, vector<16x16xbf16>,
    %c0_20 = arith.constant 0 : index
    %c0_21 = arith.constant 0 : index
    %57 = vector.load %arg7[%c0_20, %c0_21] : memref<16x32xbf16, #tpu.memory_space<vmem>>, vector<16x32xbf16>
    %c0_22 = arith.constant 0 : index
    %c0_23 = arith.constant 0 : index
    %58 = vector.load %arg4[%c0_22, %c0_23] : memref<32x128xbf16, #tpu.memory_space<vmem>>, vector<32x128xbf16>
    %cst_24 = arith.constant dense<0.000000e+00> : vector<16x128xf32>
    %59 = tpu.matmul %57, %58, %cst_24 {dimension_numbers = #tpu.dot_dimension_numbers<[1], [0], [0], [1], [0, 0, 1, 1], [], []>} : vector<16x32xbf16>, vector<32x128xbf16>, vector<16x128xf32> -> vector<16x128xf32>
    %c0_25 = arith.constant 0 : index
    %c0_26 = arith.constant 0 : index
    %60 = vector.load %arg5[%c0_25, %c0_26] : memref<1x128xf32, #tpu.memory_space<vmem>>, vector<1x128xf32>
    %61 = vector.broadcast %60 : vector<1x128xf32> to vector<16x128xf32>
    %62 = arith.addf %59, %61 : vector<16x128xf32>
    %63 = vector.shape_cast %62 : vector<16x128xf32> to vector<1x16x128xf32>
    %c0_27 = arith.constant 0 : index
    %c0_28 = arith.constant 0 : index
    %c0_29 = arith.constant 0 : index
    %64 = vector.load %arg6[%c0_27, %c0_28, %c0_29] : memref<1x16x128xf32, #tpu.memory_space<vmem>>, vector<1x16x128xf32>
    tpu.vector_store %arg6[%c0_27, %c0_28, %c0_29], %63 {strides = array<i32>} : memref<1x16x128xf32, #tpu.memory_space<vmem>>, vector<1x16x128xf32>,
    return
  }
  func.func @transform_0(%arg0: i32) -> (i32, i32, i32) {
    %c0_i32 = arith.constant 0 : i32
    %c0_i32_0 = arith.constant 0 : i32
    %c0_i32_1 = arith.constant 0 : i32
    return %arg0, %c0_i32, %c0_i32_0 : i32, i32, i32
  }
  func.func @transform_1(%arg0: i32) -> (i32, i32) {
    %c0_i32 = arith.constant 0 : i32
    %c0_i32_0 = arith.constant 0 : i32
    %c0_i32_1 = arith.constant 0 : i32
    return %c0_i32, %c0_i32_0 : i32, i32
  }
  func.func @transform_2(%arg0: i32) -> (i32, i32, i32) {
    %c0_i32 = arith.constant 0 : i32
    %c0_i32_0 = arith.constant 0 : i32
    %c0_i32_1 = arith.constant 0 : i32
    %c0_i32_2 = arith.constant 0 : i32
    return %c0_i32, %c0_i32_0, %c0_i32_1 : i32, i32, i32
  }
  func.func @transform_3(%arg0: i32) -> (i32, i32) {
    %c0_i32 = arith.constant 0 : i32
    %c0_i32_0 = arith.constant 0 : i32
    %c0_i32_1 = arith.constant 0 : i32
    return %c0_i32, %c0_i32_0 : i32, i32
  }
  func.func @transform_4(%arg0: i32) -> (i32, i32) {
    %c0_i32 = arith.constant 0 : i32
    %c0_i32_0 = arith.constant 0 : i32
    %c0_i32_1 = arith.constant 0 : i32
    return %c0_i32, %c0_i32_0 : i32, i32
  }
  func.func @transform_5(%arg0: i32) -> (i32, i32, i32) {
    %c0_i32 = arith.constant 0 : i32
    %c0_i32_0 = arith.constant 0 : i32
    %c0_i32_1 = arith.constant 0 : i32
    return %arg0, %c0_i32, %c0_i32_0 : i32, i32, i32
  }
}

</mosaic_0001>

<bundles_post_ra>
// kernel: tpu_custom_call.1
= control target key start
LH: loop header
LB: loop body
LE: loop exit
PB: predicated region body
PF: predicated region fallthrough
CT: control target
= control target key end

     0   :  { %10 = vsyncpa [#allocation4], 0  ;;  %s1552_s0 = inlined_call_operand.hbm [shape: bf16[2,16,32], index: 0, kind: input, shape index: {}]   ;;  %s1553_s1 = inlined_call_operand.hbm [shape: bf16[32,96], index: 1, kind: input, shape index: {}]   ;;  %s1554_s2 = inlined_call_operand.hbm [shape: f32[2,16,16], index: 2, kind: input, shape index: {}]   ;;  %s1555_s3 = inlined_call_operand.hbm [shape: bf16[32,128], index: 3, kind: input, shape index: {}]   ;;  %s1556_s4 = inlined_call_operand.vmem [shape: f32[1,128], index: 4, kind: input, shape index: {}]   ;;  %s1557_s5 = inlined_call_operand.hbm [shape: f32[2,16,128], index: 5, kind: output, shape index: {}]  }
   0x1   :  { %12 = vsyncpa [#allocation4 + $0x1], 0 }
   0x2   :  { %13 = vsyncpa [#allocation7], 0 }
   0x3   :  { %14 = vsyncpa [#allocation10], 0 }
   0x4   :  { %15 = vsyncpa [#allocation5], 0 }
   0x5   :  { %17 = vsyncpa [#allocation5 + $0x1], 0  ;;  %s1238_s18 = smov 0   ;;  %s1240_s19 = smov 0  }
   0x6   :  { %s1242_s20 = smov 0   ;;  %s1244_s21 = smov 0  }
   0x7 LB: > { %s1259_s22 = sadd.s32 4294967295, %s1187_s21   ;;  %s799_s23 = sadd.s32 4294967294, %s1187_s21   ;;  %s1187_s21 = sphi %s1244_s21, %s1586_s21   ;;  %s1183_s20 = sphi %s1242_s20, %s1585_s20   ;;  %s1179_s19 = sphi %s1240_s19, %s1584_s19   ;;  %s1175_s18 = sphi %s1238_s18, %s1583_s18  }
   0x8   : > { %p43_p0 = scmp.ne.s32.totalorder %s1179_s19, %s1175_s18  ;;  %p1558_p1 = scmp.eq.s32.totalorder %s1259_s22, 0 }
   0x9   : > { %p157_p3 = scmp.eq.s32.totalorder %s799_s23, 1  ;;  %p800_p5 = scmp.ge.s32.totalorder %s1187_s21, 1 }
   0xa   : > { %p1268_p4 = por %p1558_p1, %p43_p0  ;;  %p164_p7 = scmp.lt.s32.totalorder %s1187_s21, 3 }
   0xb   : > { %p1273_p6 = por %p157_p3, %p43_p0  ;;  %s1189_s27 = smov [#allocation6]  }
   0xc   : > { %s1565_s24 = scalar_select %p1268_p4, 1, 0 }
   0xd   : > { %s1566_s25 = scalar_select %p1273_p6, 1, 0 }
   0xe   : > { %p1278_p8 = pnand %p800_p5, %p164_p7  ;;  %s176_s28 = sshll.u32 %s1189_s27, 4  ;;  %s1282_s28 = int_to_ptr.vmem [resolvable:$true] %s176_s28 }
   0xf   : > { %s1190_s30 = smov [#allocation8]   ;;  %s999_s9 = scalar_lea.hbm %s1553_s1, 256 }
  0x10   : > { %s1567_s26 = scalar_select %p1278_p8, 1, 0 }
  0x11   : > { %p903_p9 = pneg %p1278_p8  ;;  %s189_s6 = sshll.u32 %s1190_s30, 4  ;;  %s1293_s6 = int_to_ptr.vmem [resolvable:$true] %s189_s6 }
  0x12   : > { %p1000_p12 = scmp.ne.s32.totalorder %s1553_s1, %s999_s9  ;;  %p1006_p5 = scmp.lt.u32.totalorder %s999_s9, %s1553_s1 }
  0x13   : > { %p1289_p11 = pnand %p903_p9, %p1558_p1 }
  0x15   : > { %p1303_p13 = pneg %p1289_p11 }
  0x17   : > { %p1002_p0 = pnand %p1303_p13, %p1000_p12 }
  0x19   : > { %p1003_p3 = pneg %p1002_p0 }
  0x1b   : > { %p1008_p7 = pnand %p1006_p5, %p1003_p3 }
  0x1d   : > { %1011 = shalt.err (!%p1008_p7)
}
  0x1e   : > { %s1012_s15 = scalar_lea.vmem %s1282_s28, 256  ;;  %p1020_p2 = scmp.lt.s32.totalorder %s1282_s28, %s1282_s28 }
  0x1f   : > { %p1013_p9 = scmp.ne.s32.totalorder %s1282_s28, %s1012_s15  ;;  %p1021_p6 = scmp.lt.s32.totalorder %s1012_s15, %s1012_s15 }
  0x21   : > { %p1015_p10 = pnand %p1013_p9, %p1303_p13  ;;  %p1022_p12 = por %p1021_p6, %p1020_p2 }
  0x23   : > { %p1016_p1 = pneg %p1015_p10 }
  0x25   : > { %p1023_p0 = pnand %p1022_p12, %p1016_p1 }
  0x27   : > { %1026 = shalt.err (!%p1023_p0)
}
  0x28   : > { %s1559_s16 = smov 64   ;;  %s1561_s17 = smov 4  }
  0x29   : > { %906 = dma.hbm_to_vmem [thread:$0]  (!%p1289_p11), %s1553_s1, 256, %s1282_s28, [#allocation7], %s1559_s16, %s1559_s16, %s1561_s17  }
  0x2a   : > { %s1027_s8 = scalar_lea.hbm %s1554_s2, 512 }
  0x2b   : > { %p1028_p1 = scmp.ne.s32.totalorder %s1554_s2, %s1027_s8  ;;  %p1034_p10 = scmp.lt.u32.totalorder %s1027_s8, %s1554_s2 }
  0x2d   : > { %p1030_p2 = pnand %p1028_p1, %p1303_p13 }
  0x2f   : > { %p1031_p6 = pneg %p1030_p2 }
  0x31   : > { %p1036_p3 = pnand %p1034_p10, %p1031_p6 }
  0x33   : > { %1039 = shalt.err (!%p1036_p3)
}
  0x34   : > { %s1040_s28 = scalar_lea.vmem %s1293_s6, 512  ;;  %p1048_p12 = scmp.lt.s32.totalorder %s1293_s6, %s1293_s6 }
  0x35   : > { %p1041_p5 = scmp.ne.s32.totalorder %s1293_s6, %s1040_s28  ;;  %p1049_p0 = scmp.lt.s32.totalorder %s1040_s28, %s1040_s28 }
  0x37   : > { %p1043_p7 = pnand %p1041_p5, %p1303_p13  ;;  %p1050_p1 = por %p1049_p0, %p1048_p12 }
  0x39   : > { %p1044_p9 = pneg %p1043_p7 }
  0x3b   : > { %p1051_p2 = pnand %p1050_p1, %p1044_p9 }
  0x3d   : > { %1054 = shalt.err (!%p1051_p2)
}
  0x3e   : > { %s1193_s14 = smov 128   ;;  %s1194_s15 = smov 8  }
  0x3f   : > { %909 = dma.hbm_to_vmem [thread:$0]  (!%p1289_p11), %s1554_s2, 512, %s1293_s6, [#allocation7], %s1193_s14, %s1193_s14, %s1194_s15  }
  0x40   : > { %s1195_s30 = smov [#allocation9]   ;;  %s1351_s8 = sadd.s32 1, %s1187_s21  }
  0x41   : > { %s202_s7 = sshll.u32 %s1195_s30, 4  ;;  %s1055_s11 = scalar_lea.hbm %s1555_s3, 256  ;;  %s203_s7 = int_to_ptr.vmem [resolvable:$true] %s202_s7 }
  0x42   : > { %p1056_p6 = scmp.ne.s32.totalorder %s1555_s3, %s1055_s11  ;;  %p1062_p5 = scmp.lt.u32.totalorder %s1055_s11, %s1555_s3 }
  0x44   : > { %p1058_p10 = pnand %p1056_p6, %p1303_p13 }
  0x46   : > { %p1059_p3 = pneg %p1058_p10 }
  0x48   : > { %p1064_p7 = pnand %p1062_p5, %p1059_p3 }
  0x4a   : > { %1067 = shalt.err (!%p1064_p7)
}
  0x4b   : > { %s1068_s6 = scalar_lea.vmem %s203_s7, 256  ;;  %p1076_p1 = scmp.lt.s32.totalorder %s203_s7, %s203_s7 }
  0x4c   : > { %p1069_p9 = scmp.ne.s32.totalorder %s203_s7, %s1068_s6  ;;  %p1077_p2 = scmp.lt.s32.totalorder %s1068_s6, %s1068_s6 }
  0x4e   : > { %p1071_p12 = pnand %p1069_p9, %p1303_p13  ;;  %p1078_p4 = por %p1077_p2, %p1076_p1 }
  0x50   : > { %p1072_p0 = pneg %p1071_p12 }
  0x52   : > { %p1079_p8 = pnand %p1078_p4, %p1072_p0 }
  0x54   : > { %1082 = shalt.err (!%p1079_p8)
}
  0x55   : > { %s1570_s14 = smov 4   ;;  %s1571_s15 = smov 64  }
  0x56   : > { %912 = dma.hbm_to_vmem [thread:$0]  (!%p1289_p11), %s1555_s3, 256, %s203_s7, [#allocation10], %s1571_s15, %s1571_s15, %s1570_s14  }
  0x57   : > { %s27_s12 = ssub.s32 %s1187_s21, %s1351_s8  ;;  %s30_s29 = sadd.s32 1, %s1183_s20 }
  0x58   : > { %p28_p4 = scmp.eq.s32.totalorder %s27_s12, 0  ;;  %p37_p8 = scmp.ne.s32.totalorder %s1183_s20, %s1179_s19 }
  0x59   : > { %p38_p13 = scmp.eq.s32.totalorder %s1187_s21, 0  ;;  %p924_p6 = scmp.lt.s32.totalorder %s1187_s21, 2 }
  0x5a   : > { %s1382_s23 = scalar_select %p28_p4, %s1183_s20, %s30_s29  }
  0x5b   : > { %p39_p10 = por %p38_p13, %p37_p8  ;;  %p1572_p3 = scmp.eq.s32.totalorder %s1259_s22, 1 }
  0x5c   : > { %s219_s30 = sand.u32 1, %s1183_s20   ;;  %s831_s9 = sshll.u32 %s1187_s21, 7 }
  0x5d   : > { %p1386_p5 = por %p1572_p3, %p37_p8  ;;  %s805_s10 = sshll.u32 %s219_s30, 3 }
  0x5e   : > { %s1395_s7 = scalar_lea.hbm %s1552_s0, %s831_s9  ;;  %s223_s28 = scalar_lea.vmem [#allocation3], %s805_s10 }
  0x5f   : > { %s230_s6 = sshll.u32 %s223_s28, 4  ;;  %p1397_p11 = pnand %p924_p6, %p39_p10  ;;  %s1401_s6 = int_to_ptr.vmem [resolvable:$true] %s230_s6 }
  0x60   : > { %s1403_s17 = scalar_lea.sflag [#allocation4], %s219_s30  ;;  %s1083_s12 = scalar_lea.hbm %s1395_s7, 128 }
  0x61   : > { %p1084_p7 = scmp.ne.s32.totalorder %s1395_s7, %s1083_s12  ;;  %p1085_p9 = pneg %p1397_p11 }
  0x62   : > { %s1088_s10 = scalar_lea.hbm %s1552_s0, 256  ;;  %p1089_p1 = scmp.lt.u32.totalorder %s1395_s7, %s1552_s0 }
  0x63   : > { %p1086_p12 = pnand %p1085_p9, %p1084_p7  ;;  %p1090_p2 = scmp.lt.u32.totalorder %s1088_s10, %s1083_s12 }
  0x64   : > { %p1092_p8 = scmp.lt.u32.totalorder %s1083_s12, %s1395_s7 }
  0x65   : > { %p1087_p0 = pneg %p1086_p12  ;;  %p1091_p4 = por %p1090_p2, %p1089_p1 }
  0x67   : > { %p1093_p13 = por %p1092_p8, %p1091_p4 }
  0x69   : > { %p1094_p6 = pnand %p1093_p13, %p1087_p0 }
  0x6b   : > { %1097 = shalt.err (!%p1094_p6)
}
  0x6c   : > { %s1098_s30 = scalar_lea.vmem %s1401_s6, 128  ;;  %s1196_s28 = smov [#allocation3]  }
  0x6d   : > { %p1099_p10 = scmp.ne.s32.totalorder %s1401_s6, %s1098_s30  ;;  %s1103_s29 = sshll.u32 %s1196_s28, 4  ;;  %s1104_s29 = int_to_ptr.vmem [resolvable:$false] %s1103_s29 }
  0x6e   : > { %s1105_s9 = scalar_lea.vmem %s1104_s29, 256  ;;  %p1106_p12 = scmp.lt.s32.totalorder %s1401_s6, %s1104_s29 }
  0x6f   : > { %p1101_p3 = pnand %p1099_p10, %p1085_p9  ;;  %p1107_p1 = scmp.lt.s32.totalorder %s1105_s9, %s1098_s30 }
  0x71   : > { %p1102_p7 = pneg %p1101_p3  ;;  %p1108_p2 = por %p1107_p1, %p1106_p12 }
  0x73   : > { %p1109_p4 = pnand %p1108_p2, %p1102_p7 }
  0x75   : > { %1112 = shalt.err (!%p1109_p4)
}
  0x76   : > { %916 = dma.hbm_to_vmem [thread:$0]  (!%p1397_p11), %s1395_s7, 128, %s1401_s6, %s1403_s17, %s1571_s15, %s1571_s15, %s1570_s14  }
  0x77   : > { %p1575_p9 = scmp.ne.s32.totalorder %s1567_s26, 0 }
  0x78   : > { %s1437_s12 = sand.u32 (!%p1575_p9), 1, %s1179_s19   ;;  %p1576_p0 = scmp.ne.s32.totalorder (!%p1575_p9), %s1565_s24, 0 }
  0x79   : > { %242 = sbr.rel (%p1575_p9) target bundleno = 1594 (0x63a), region = 40  ;;  %s809_s10 = sshll.u32 (!%p1575_p9), %s1437_s12, 3 }
  0x7a   : > { %s245_s11 = scalar_lea.sflag (!%p1575_p9), [#allocation4], %s1437_s12  ;;  %s248_s13 = scalar_lea.vmem (!%p1575_p9), [#allocation3], %s809_s10 }
  0x80   : > { %1158 = dma.done.wait (%p1576_p0), %s245_s11, 128  }
  0x81   : > { %1160 = vsyncadd (%p1576_p0), %s245_s11, 4294967168  ;;  %p1577_p8 = scmp.eq.s32.totalorder %s1259_s22, 0 }
  0x83   : > { %1162 = dma.done.wait (%p1577_p8), [#allocation7], 768   ;;  %p1578_p11 = pmov %p1577_p8 }
  0x84   : > { %p1579_p13 = pmov %p1577_p8 }
  0x85   : > { %1164 = vsyncadd (%p1578_p11), [#allocation7], 4294966528 }
  0x86   : > { %1166 = dma.done.wait (%p1579_p13), [#allocation10], 256   ;;  %p1580_p6 = pmov %p1577_p8 }
  0x87   : > { %v1197_v0 = vmov 0.0   ;;  %vm1198_vm0 = vmmov 0   ;;  %v978_v1 = vld [vmem:[#allocation6] sm:$0xff]   ;;  %v979_v2 = vld [vmem:[#allocation6 + $0x8] sm:$0xff]   ;;  %v980_v3 = vld [vmem:[%s248_s13] sm:$0xff]   ;;  %vm311_vm1 = vcmask 261120  }
  0x88   : > { %1168 = vsyncadd (%p1580_p6), [#allocation10], 4294967040  ;;  %847 = vmatprep.subr.bf16.mxu0 %v1197_v0  ;;  %851 = vmatprep.mubr.msk.bf16.mxu0 %vm1198_vm0, %v1197_v0  ;;  %s1199_s24 = smov 112   ;;  %s1200_s26 = smov 96   ;;  %vm362_vm2 = vcmask 130048   ;;  %v357_v14 = vld [vmem:[#allocation8] sm:$0xff] }
  0x89   : > { %855 = vmatprep.subr.bf16.mxu1 %v1197_v0  ;;  %857 = vmatprep.mubr.msk.bf16.mxu1 %vm1198_vm0, %v1197_v0  ;;  %s1201_s14 = smov 80   ;;  %v358_v16 = vld [vmem:[#allocation8 + $0x8] sm:$0xff]  ;;  %v483_v24 = vld [vmem:[#allocation8 + $0x10] sm:$0xff]  ;;  %v484_v26 = vld [vmem:[#allocation8 + $0x18] sm:$0xff]  ;;  %s1202_s15 = smov 48   ;;  %vm611_vm3 = vcmask 261248  }
  0x8a   : > { %848 = vmatpush3.bf16.msra.mxu0 %v978_v1  ;;  %s1203_s7 = smov 64   ;;  %s1204_s6 = smov 16  }
  0x8b   : > { %849 = vmatprep.subr.bf16.mxu0 %v1197_v0  ;;  %s813_s16 = sshll.u32 %s1437_s12, 4  ;;  %s832_s9 = sshll.u32 %s1259_s22, 8 }
  0x8c   : > { %s286_s28 = scalar_lea.vmem [#allocation11], %s813_s16  ;;  %s1508_s13 = scalar_lea.hbm %s1557_s5, %s832_s9 }
  0x8d   : > { %s697_s29 = sshll.u32 %s286_s28, 4  ;;  %s1503_s29 = int_to_ptr.vmem [resolvable:$true] %s697_s29 }
  0x8e   : > { %850 = vmatpush3.bf16.msra.mxu0 %v979_v2  ;;  %s1113_s22 = scalar_lea.vmem %s1503_s29, 256 }
  0x8f   : > { %861 = vmatprep.subr.bf16.mxu0 %v1197_v0  ;;  %p1114_p10 = scmp.ne.s32.totalorder %s1503_s29, %s1113_s22 }
  0x91   : > { %852 = vmatmul.mubr.msk.bf16.vlgmr.msra.gmra.mrb[0].mxu0 %vm311_vm1, %v980_v3  ;;  %p1115_p3 = pnand %p1114_p10, %p1386_p5 }
  0x92   : > { %863 = vmatprep.mubr.msk.bf16.mxu0 %vm1198_vm0, %v1197_v0 }
  0x93   : > { %p1116_p7 = pneg %p1115_p3 }
 0x164   : > { %v349_v4 = vpop.f32.mrb[0].mxu0 }
 0x165   : > { %v853_v5 = vpop.f32.mrb[1].mxu0 }
 0x166   : > { %v352_v6 = vpop.f32.mrb[2].mxu0 }
 0x167   : > { %v1464_v7 = vpack.c.bf16 %v352_v6, %v349_v4  ;;  %v854_v8 = vpop.f32.mrb[3].mxu0 }
 0x168   : > { %v981_v8 = vld [vmem:[#allocation9] sm:$0xff]  }
 0x169   : > { %485 = vrot.lane.b32.xlu1 %v1464_v7, %s1199_s24  ;;  %360 = vrot.lane.b32.xlu0 %v1464_v7, %s1200_s26  ;;  %s684_s24 = scalar_lea.sflag [#allocation5], %s1437_s12  ;;  %s1205_s26 = smov [#allocation11]  }
 0x16d   : > { %487 = vrot.lane.b32.xlu0 %v1464_v7, %s1201_s14  ;;  %s1117_s14 = sshll.u32 %s1205_s26, 4  ;;  %s1118_s14 = int_to_ptr.vmem [resolvable:$false] %s1117_s14 }
 0x16e   : > { %p1120_p12 = scmp.lt.s32.totalorder %s1503_s29, %s1118_s14 }
 0x1db   : > { %v361_v9 = vpop.permute.xlu0 %360  ;;  %v486_v13 = vpop.permute.xlu1 %485 }
 0x1dc   : > { %v367_v10 = vsel %vm362_vm2, %v361_v9, 0 }
 0x1dd   : > { %856 = vmatpush3.bf16.xpose.msra.mxu1 %v367_v10 }
 0x1de   : > { %867 = vmatprep.subr.bf16.mxu1 %v1197_v0 }
 0x1df   : > { %v488_v11 = vpop.permute.xlu0 %487 }
 0x1e0   : > { %v493_v12 = vsel %vm362_vm2, %v488_v11, 0  ;;  %v982_v11 = vld [vmem:[#allocation9 + $0x8] sm:$0xff]  }
 0x1e4   : > { %858 = vmatmul.mubr.msk.bf16.vlgmr.msra.gmra.mrb[0].mxu1 %vm362_vm2, %v1464_v7 }
 0x1e5   : > { %868 = vmatpush3.bf16.xpose.msra.mxu1 %v493_v12  ;;  %869 = vmatprep.mubr.msk.bf16.mxu1 %vm1198_vm0, %v1197_v0 }
 0x1e6   : > { %879 = vmatprep.subr.bf16.mxu1 %v1197_v0 }
 0x1ec   : > { %870 = vmatmul.mubr.msk.bf16.vlgmr.msra.gmra.mrb[4].mxu1 %vm362_vm2, %v486_v13 }
 0x1ed   : > { %883 = vmatprep.mubr.msk.bf16.mxu1 %vm1198_vm0, %v1197_v0  ;;  %880 = vmatpush3.bf16.msra.mxu1 %v981_v8 }
 0x1ee   : > { %881 = vmatprep.subr.bf16.mxu1 %v1197_v0 }
 0x1f1   : > { %882 = vmatpush3.bf16.msra.mxu1 %v982_v11 }
 0x2b7   : > { %v403_v15 = vpop.f32.mrb[0].mxu1 }
 0x2b8   : > { %v404_v17 = vadd.f32 %v403_v15, %v357_v14  ;;  %v859_v18 = vpop.f32.mrb[1].mxu1 }
 0x2b9   : > { %v406_v19 = vpop.f32.mrb[2].mxu1 }
 0x2ba   : > { %v407_v20 = vadd.f32 %v406_v19, %v358_v16  ;;  %v860_v21 = vpop.f32.mrb[3].mxu1  ;;  %v410_v22 = vsel %vm362_vm2, %v404_v17, -inf }
 0x2bb   : > { %411 = vmax.xlane.f32.xlu1 %v410_v22 }
 0x2bc   : > { %v413_v23 = vsel %vm362_vm2, %v407_v20, -inf }
 0x2bd   : > { %414 = vmax.xlane.f32.xlu0 %v413_v23 }
 0x2bf   : > { %v529_v25 = vpop.f32.mrb[4].mxu1 }
 0x2c0   : > { %v530_v27 = vadd.f32 %v529_v25, %v483_v24  ;;  %v871_v28 = vpop.f32.mrb[5].mxu1 }
 0x2c1   : > { %v532_v29 = vpop.f32.mrb[6].mxu1 }
 0x2c2   : > { %v533_v30 = vadd.f32 %v532_v29, %v484_v26  ;;  %v872_v31 = vpop.f32.mrb[7].mxu1  ;;  %v536_v32 = vsel %vm362_vm2, %v530_v27, -inf }
 0x2c3   : > { %537 = vmax.xlane.f32.xlu0 %v536_v32 }
 0x2c4   : > { %v539_v33 = vsel %vm362_vm2, %v533_v30, -inf }
 0x2c5   : > { %540 = vmax.xlane.f32.xlu1 %v539_v33 }
 0x348   : > { %v412_v34 = vpop.xlane.xlu1 %411 }
 0x349   : > { %v416_v35 = vsub.f32 %v404_v17, %v412_v34 }
 0x34a   : > { %v415_v36 = vpop.xlane.xlu0 %414 }
 0x34b   : > { %v418_v37 = vmul.f32 1.442695, %v416_v35  ;;  %v417_v38 = vsub.f32 %v407_v20, %v415_v36 }
 0x34d   : > { %983 = vpow2.f32 %v418_v37  ;;  %v420_v39 = vmul.f32 1.442695, %v417_v38 }
 0x34f   : > { %985 = vpow2.f32 %v420_v39 }
 0x350   : > { %v538_v40 = vpop.xlane.xlu0 %537 }
 0x351   : > { %v542_v41 = vsub.f32 %v530_v27, %v538_v40 }
 0x352   : > { %v541_v42 = vpop.xlane.xlu1 %540 }
 0x353   : > { %v544_v43 = vmul.f32 1.442695, %v542_v41  ;;  %v543_v44 = vsub.f32 %v533_v30, %v541_v42 }
 0x355   : > { %987 = vpow2.f32 %v544_v43  ;;  %v546_v45 = vmul.f32 1.442695, %v543_v44 }
 0x357   : > { %v984_v46 = vpop.eup %983  ;;  %989 = vpow2.f32 %v546_v45 }
 0x358   : > { %v422_v47 = vsel %vm362_vm2, %v984_v46, 0.0 }
 0x359   : > { %v986_v48 = vpop.eup %985  ;;  %423 = vadd.xlane.f32.xlu0 %v422_v47 }
 0x35a   : > { %v425_v49 = vsel %vm362_vm2, %v986_v48, 0.0 }
 0x35b   : > { %426 = vadd.xlane.f32.xlu1 %v425_v49 }
 0x35f   : > { %v988_v50 = vpop.eup %987 }
 0x360   : > { %v548_v51 = vsel %vm362_vm2, %v988_v50, 0.0 }
 0x361   : > { %v990_v52 = vpop.eup %989  ;;  %549 = vadd.xlane.f32.xlu0 %v548_v51 }
 0x362   : > { %v551_v53 = vsel %vm362_vm2, %v990_v52, 0.0 }
 0x363   : > { %552 = vadd.xlane.f32.xlu1 %v551_v53 }
 0x374   : > { %559 = vrot.lane.b32.xlu1 %v1464_v7, %s1202_s15  ;;  %s1119_s15 = scalar_lea.vmem %s1118_s14, 512 }
 0x375   : > { %p1121_p1 = scmp.lt.s32.totalorder %s1119_s15, %s1113_s22 }
 0x377   : > { %433 = vrot.lane.b32.xlu0 %v1464_v7, %s1203_s7  ;;  %p1122_p2 = por %p1121_p1, %p1120_p12 }
 0x379   : > { %p1123_p4 = pnand %p1122_p2, %p1116_p7 }
 0x3e6   : > { %v424_v54 = vpop.xlane.xlu0 %423 }
 0x3e7   : > { %991 = vrcp.f32 %v424_v54 }
 0x3e8   : > { %v427_v55 = vpop.xlane.xlu1 %426 }
 0x3e9   : > { %993 = vrcp.f32 %v427_v55 }
 0x3ee   : > { %v550_v56 = vpop.xlane.xlu0 %549 }
 0x3ef   : > { %995 = vrcp.f32 %v550_v56 }
 0x3f0   : > { %v553_v57 = vpop.xlane.xlu1 %552 }
 0x3f1   : > { %v992_v58 = vpop.eup %991  ;;  %997 = vrcp.f32 %v553_v57 }
 0x3f2   : > { %v434_v59 = vpop.permute.xlu0 %433  ;;  %v430_v61 = vmul.f32 %v992_v58, %v984_v46 }
 0x3f3   : > { %v994_v60 = vpop.eup %993  ;;  %862 = vmatpush3.bf16.msra.mxu0 %v434_v59 }
 0x3f4   : > { %v431_v62 = vmul.f32 %v994_v60, %v986_v48  ;;  %873 = vmatprep.subr.bf16.mxu0 %v1197_v0  ;;  %v560_v1 = vpop.permute.xlu1 %559 }
 0x3f6   : > { %v432_v63 = vpack.c.bf16 %v431_v62, %v430_v61 }
 0x3f8   : > { %864 = vmatmul.mubr.msk.bf16.vlgmr.msra.gmra.mrb[4].mxu0 %vm362_vm2, %v432_v63 }
 0x3f9   : > { %v996_v2 = vpop.eup %995  ;;  %874 = vmatpush3.bf16.msra.mxu0 %v560_v1  ;;  %875 = vmatprep.mubr.msk.bf16.mxu0 %vm1198_vm0, %v1197_v0  ;;  %v822_v0 = vld [vmem:[%s1556_s4] ss:$0 sm:$0xff] }
 0x3fa   : > { %v556_v4 = vmul.f32 %v996_v2, %v988_v50 }
 0x3fb   : > { %v998_v3 = vpop.eup %997 }
 0x3fc   : > { %v557_v5 = vmul.f32 %v998_v3, %v990_v52 }
 0x3fe   : > { %v558_v6 = vpack.c.bf16 %v557_v5, %v556_v4 }
 0x400   : > { %876 = vmatmul.mubr.msk.bf16.vlgmr.msra.gmra.mrb[8].mxu0 %vm362_vm2, %v558_v6 }
 0x4cb   : > { %v473_v7 = vpop.f32.mrb[4].mxu0 }
 0x4cc   : > { %v865_v9 = vpop.f32.mrb[5].mxu0 }
 0x4cd   : > { %v476_v10 = vpop.f32.mrb[6].mxu0 }
 0x4ce   : > { %v480_v12 = vpack.c.bf16 %v476_v10, %v473_v7  ;;  %v866_v13 = vpop.f32.mrb[7].mxu0 }
 0x4d0   : > { %481 = vst.msk [vmem:[#allocation2] sm:$0xff] %vm362_vm2, %v480_v12 }
 0x4d3   : > { %v599_v14 = vpop.f32.mrb[8].mxu0 }
 0x4d4   : > { %v877_v15 = vpop.f32.mrb[9].mxu0 }
 0x4d5   : > { %v602_v16 = vpop.f32.mrb[10].mxu0 }
 0x4d6   : > { %v606_v17 = vpack.c.bf16 %v602_v16, %v599_v14  ;;  %v878_v18 = vpop.f32.mrb[11].mxu0 }
 0x4d8   : > { %608 = vrot.lane.b32.xlu1 %v606_v17, %s1204_s6 }
 0x54a   : > { %v609_v19 = vpop.permute.xlu1 %608 }
 0x54b   : > { %612 = vst.msk [vmem:[#allocation2] sm:$0xff] %vm611_vm3, %v609_v19 }
 0x552   : > { %v613_v20 = vld [vmem:[#allocation2] sm:$0xff] }
 0x553   : > { %884 = vmatmul.mubr.msk.bf16.vlgmr.msra.gmra.mrb[8].mxu1 %vm311_vm1, %v613_v20 }
 0x626   : > { %v674_v21 = vpop.f32.mrb[8].mxu1 }
 0x627   : > { %v675_v22 = vadd.f32 %v822_v0, %v674_v21  ;;  %v885_v23 = vpop.f32.mrb[9].mxu1 }
 0x628   : > { %v677_v24 = vpop.f32.mrb[10].mxu1 }
 0x629   : > { %681 = vst [vmem:[%s286_s28] sm:$0xff] %v675_v22  ;;  %v678_v25 = vadd.f32 %v822_v0, %v677_v24  ;;  %v886_v26 = vpop.f32.mrb[11].mxu1 }
 0x62b   : > { %682 = vst [vmem:[%s286_s28 + $0x8] sm:$0xff] %v678_v25 }
 0x62c   : > { %1126 = shalt.err (!%p1123_p4)
}
 0x62d   : > { %s1127_s7 = scalar_lea.hbm %s1508_s13, 256  ;;  %s1131_s17 = scalar_lea.hbm %s1557_s5, 512 }
 0x62e   : > { %p1128_p9 = scmp.ne.s32.totalorder %s1508_s13, %s1127_s7  ;;  %p1132_p11 = scmp.lt.u32.totalorder %s1508_s13, %s1557_s5 }
 0x62f   : > { %p1133_p13 = scmp.lt.u32.totalorder %s1131_s17, %s1127_s7  ;;  %p1135_p10 = scmp.lt.u32.totalorder %s1127_s7, %s1508_s13 }
 0x630   : > { %p1129_p0 = pnand %p1128_p9, %p1386_p5 }
 0x631   : > { %p1134_p6 = por %p1133_p13, %p1132_p11 }
 0x632   : > { %p1130_p8 = pneg %p1129_p0 }
 0x633   : > { %p1136_p3 = por %p1135_p10, %p1134_p6 }
 0x635   : > { %p1137_p7 = pnand %p1136_p3, %p1130_p8 }
 0x637   : > { %1140 = shalt.err (!%p1137_p7)
}
 0x638   : > { %s1206_s9 = smov 128   ;;  %s1207_s10 = smov 8  }
 0x639   : > { %901 = dma.vmem_to_hbm [thread:$0]  (%p1386_p5), %s1503_s29, 256, %s1508_s13, %s684_s24, %s1206_s9, %s1206_s9, %s1207_s10  }
 0x63a PF: > { %s712_s11 = sand.u32 1, %s1175_s18   ;;  %p1581_p12 = scmp.ne.s32.totalorder %s1566_s25, 0 }
 0x63b   : > { %p1582_p1 = scmp.ge.s32.totalorder %s1187_s21, 2  ;;  %s713_s22 = scalar_lea.sflag [#allocation5], %s712_s11 }
 0x63d   : > { %p918_p2 = pnand %p1582_p1, %p1581_p12 }
 0x63f   : > { %1170 = dma.done.wait (!%p918_p2), %s713_s22, 256  }
 0x640   : > { %1172 = vsyncadd (!%p918_p2), %s713_s22, 4294967040  ;;  %p20_p4 = scmp.ge.s32.totalorder %s1351_s8, 4   ;;  %s1583_s18 = smov %s1179_s19 }
 0x641   : > { %s1584_s19 = smov %s1183_s20  ;;  %s1585_s20 = smov %s1382_s23 }
 0x642   : > { %s1586_s21 = smov %s1351_s8  ;;  %22 = sbr.rel (!%p20_p4) target bundleno = 7 (0x7), region = 98 }
 0x649   :  { %718 = vsyncpa [#allocation4], 1 }
 0x64a   :  { %720 = vsyncpa [#allocation4 + $0x1], 1 }
 0x64b   :  { %721 = vsyncpa [#allocation7], 1 }
 0x64c   :  { %722 = vsyncpa [#allocation10], 1 }
 0x64d   :  { %723 = vsyncpa [#allocation5], 1 }
 0x64e   :  { %725 = vsyncpa [#allocation5 + $0x1], 1 }

</bundles_post_ra>
